<compile_context>
chip_gen: v7x
topology: tpu7x:2x2x1
jax: 0.10.0
libtpu: 0.0.40
codegen_flags: <defaults>
</compile_context>

<pallas_src>
import functools

import jax
import jax.numpy as jnp
from jax.experimental import pallas as pl
from jax.experimental.pallas import tpu as pltpu

KSIZE = 7           # depthwise conv kernel size
HALO = KSIZE // 2   # = 3 (Conv1d padding)
LANE = 128


def _round_up(x, m):
    return (x + m - 1) // m * m


def _pick_tile(t, max_tile_t):
    assert max_tile_t % LANE == 0
    t_pad = _round_up(t, LANE)
    tile_t = min(max_tile_t, t_pad)
    t_pad = _round_up(t_pad, tile_t)
    return tile_t, t_pad


# -----------------------------------------------------------------------------
# Fused ConvNeXt block kernel: one (batch, T-tile) grid step per invocation.
# -----------------------------------------------------------------------------
def _convnext_block_kernel(xl_ref, xc_ref, xr_ref, m_ref,
                           dww_ref, dwb_ref, g_ref, b_ref,
                           w1_ref, b1_ref, w2_ref, b2_ref,
                           o_ref, xe_ref, *, eps):
    C = xc_ref.shape[1]
    tt = xc_ref.shape[2]
    t_idx = pl.program_id(1)
    n_t = pl.num_programs(1)

    xc = xc_ref[0].astype(jnp.float32)                                 # (C, tt)
    m = m_ref[0].astype(jnp.float32)                                   # (1, tt)

    # Depthwise-conv halo: last / first LANE columns of the neighbouring tiles,
    # zeroed at the sequence boundaries (== Conv1d zero padding).
    left = xl_ref[0, :, pl.ds(tt - LANE, LANE)].astype(jnp.float32)    # (C, 128)
    right = xr_ref[0, :, pl.ds(0, LANE)].astype(jnp.float32)           # (C, 128)
    left = jnp.where(t_idx == 0, jnp.zeros_like(left), left)
    right = jnp.where(t_idx == n_t - 1, jnp.zeros_like(right), right)

    # Assemble the haloed window [left | centre | right] in VMEM scratch
    # (all stores are 128-aligned; the conv taps below are shifted loads).
    xe_ref[:, pl.ds(0, LANE)] = left
    xe_ref[:, pl.ds(LANE, tt)] = xc
    xe_ref[:, pl.ds(LANE + tt, LANE)] = right

    # --- depthwise Conv1d (cross-correlation), kernel 7, padding 3 ----------
    dww = dww_ref[...]                                                 # (C, 7)
    acc = jnp.zeros((C, tt), jnp.float32)
    for k in range(KSIZE):                                             # unrolled
        acc = acc + dww[:, k:k + 1] * xe_ref[:, pl.ds(LANE - HALO + k, tt)]
    h = (acc + dwb_ref[...]) * m                                       # (C, tt)

    # --- channel-wise LayerNorm (reduce over C = sublane axis) --------------
    mean = jnp.mean(h, axis=0, keepdims=True)                          # (1, tt)
    var = jnp.mean(jnp.square(h - mean), axis=0, keepdims=True)
    hn = (h - mean) * jax.lax.rsqrt(var + eps)
    hn = hn * g_ref[...] + b_ref[...]

    # --- pointwise MLP: Linear(C->F) -> GELU -> Linear(F->C) ----------------
    z = jnp.dot(w1_ref[...], hn, preferred_element_type=jnp.float32) + b1_ref[...]
    # TODO(synk): PyTorch nn.GELU() default is exact (erf); the tanh
    # approximation is used here (erf lowering is not guaranteed on Mosaic).
    z = jax.nn.gelu(z, approximate=True)
    u = jnp.dot(w2_ref[...], z, preferred_element_type=jnp.float32) + b2_ref[...]

    # --- residual + mask ------------------------------------------------------
    o_ref[0] = ((u + xc) * m).astype(o_ref.dtype)


def convnext_block(x, x_mask, p, *, eps, tile_t, vmem_limit_bytes=None):
    """One fused ConvNeXtBlock. x: (B, C, T), x_mask: (B, 1, T), T % tile_t == 0."""
    B, C, T = x.shape
    Fh = p["w1"].shape[0]
    n_t = T // tile_t
    f32 = jnp.float32

    weight_specs = [
        pl.BlockSpec((C, KSIZE), lambda b, t: (0, 0)),   # dw_w  (VMEM-resident)
        pl.BlockSpec((C, 1), lambda b, t: (0, 0)),       # dw_b
        pl.BlockSpec((C, 1), lambda b, t: (0, 0)),       # gamma
        pl.BlockSpec((C, 1), lambda b, t: (0, 0)),       # beta
        pl.BlockSpec((Fh, C), lambda b, t: (0, 0)),      # w1
        pl.BlockSpec((Fh, 1), lambda b, t: (0, 0)),      # b1
        pl.BlockSpec((C, Fh), lambda b, t: (0, 0)),      # w2
        pl.BlockSpec((C, 1), lambda b, t: (0, 0)),       # b2
    ]

    return pl.pallas_call(
        functools.partial(_convnext_block_kernel, eps=eps),
        out_shape=jax.ShapeDtypeStruct((B, C, T), x.dtype),
        grid=(B, n_t),
        in_specs=[
            # previous / current / next T tiles of the same activation (halo).
            pl.BlockSpec((1, C, tile_t),
                         lambda b, t: (b, 0, jnp.maximum(t - 1, 0))),
            pl.BlockSpec((1, C, tile_t), lambda b, t: (b, 0, t)),
            pl.BlockSpec((1, C, tile_t),
                         lambda b, t: (b, 0, jnp.minimum(t + 1, n_t - 1))),
            pl.BlockSpec((1, 1, tile_t), lambda b, t: (b, 0, t)),      # mask
        ] + weight_specs,
        out_specs=pl.BlockSpec((1, C, tile_t), lambda b, t: (b, 0, t)),
        scratch_shapes=[pltpu.VMEM((C, tile_t + 2 * LANE), jnp.float32)],
        compiler_params=pltpu.CompilerParams(
            dimension_semantics=("parallel", "parallel"),
            vmem_limit_bytes=vmem_limit_bytes,
        ),
    )(x, x, x, x_mask,
      p["dw_w"].astype(f32), p["dw_b"].astype(f32),
      p["gamma"].astype(f32), p["beta"].astype(f32),
      p["w1"].astype(f32), p["b1"].astype(f32),
      p["w2"].astype(f32), p["b2"].astype(f32))


# -----------------------------------------------------------------------------
# conv_res: 1x1 Conv1d over channels (+ mask), T-tiled.
# -----------------------------------------------------------------------------
def _pointwise_conv_kernel(x_ref, m_ref, w_ref, b_ref, o_ref):
    x = x_ref[0].astype(jnp.float32)                                   # (Cin, tt)
    y = jnp.dot(w_ref[...], x, preferred_element_type=jnp.float32) + b_ref[...]
    o_ref[0] = (y * m_ref[0].astype(jnp.float32)).astype(o_ref.dtype)


def pointwise_conv(x, x_mask, w, b, *, tile_t, vmem_limit_bytes=None):
    B, Cin, T = x.shape
    Cout = w.shape[0]
    n_t = T // tile_t
    return pl.pallas_call(
        _pointwise_conv_kernel,
        out_shape=jax.ShapeDtypeStruct((B, Cout, T), x.dtype),
        grid=(B, n_t),
        in_specs=[
            pl.BlockSpec((1, Cin, tile_t), lambda b, t: (b, 0, t)),
            pl.BlockSpec((1, 1, tile_t), lambda b, t: (b, 0, t)),
            pl.BlockSpec((Cout, Cin), lambda b, t: (0, 0)),
            pl.BlockSpec((Cout, 1), lambda b, t: (0, 0)),
        ],
        out_specs=pl.BlockSpec((1, Cout, tile_t), lambda b, t: (b, 0, t)),
        compiler_params=pltpu.CompilerParams(
            dimension_semantics=("parallel", "parallel"),
            vmem_limit_bytes=vmem_limit_bytes,
        ),
    )(x, x_mask, w.astype(jnp.float32), b.astype(jnp.float32))


# -----------------------------------------------------------------------------
# Full ConvNeXt forward.
# -----------------------------------------------------------------------------
def convnext_forward(x, x_mask, params, *, eps=1e-5, max_tile_t=512,
                     vmem_limit_bytes=None):
    """ConvNeXt.forward for x (B, C, T), x_mask (B, 1, T)."""
    B, C, T = x.shape
    tile_t, t_pad = _pick_tile(T, max_tile_t)
    pad = t_pad - T
    h = jnp.pad(x, ((0, 0), (0, 0), (0, pad)))
    m = jnp.pad(x_mask, ((0, 0), (0, 0), (0, pad)))
    for lp in params["layers"]:
        h = convnext_block(h, m, lp, eps=eps, tile_t=tile_t,
                           vmem_limit_bytes=vmem_limit_bytes)
    if params.get("res_w") is not None:
        h = pointwise_conv(h, m, params["res_w"], params["res_b"],
                           tile_t=tile_t, vmem_limit_bytes=vmem_limit_bytes)
    else:
        h = h * m          # conv_res == Identity; still apply the mask
    return h[:, :, :T]


# -----------------------------------------------------------------------------
# Pure-JAX reference mirroring the PyTorch module (same tanh-GELU).
# -----------------------------------------------------------------------------
def convnext_forward_ref(x, x_mask, params, *, eps=1e-5):
    hp = jax.lax.Precision.HIGHEST
    h = x.astype(jnp.float32)
    m = x_mask.astype(jnp.float32)
    for lp in params["layers"]:
        dw = jax.lax.conv_general_dilated(
            h, lp["dw_w"][:, None, :].astype(jnp.float32),
            window_strides=(1,), padding=[(HALO, HALO)],
            dimension_numbers=("NCH", "OIH", "NCH"),
            feature_group_count=h.shape[1], precision=hp)
        dw = (dw + lp["dw_b"].reshape(1, -1, 1)) * m
        mean = jnp.mean(dw, axis=1, keepdims=True)
        var = jnp.mean(jnp.square(dw - mean), axis=1, keepdims=True)
        y = (dw - mean) * jax.lax.rsqrt(var + eps)
        y = y * lp["gamma"].reshape(1, -1, 1) + lp["beta"].reshape(1, -1, 1)
        z = jnp.einsum("fc,bct->bft", lp["w1"], y, precision=hp)
        z = jax.nn.gelu(z + lp["b1"].reshape(1, -1, 1), approximate=True)
        u = jnp.einsum("cf,bft->bct", lp["w2"], z, precision=hp)
        u = u + lp["b2"].reshape(1, -1, 1)
        h = (u + h) * m
    if params.get("res_w") is not None:
        h = jnp.einsum("oc,bct->bot", params["res_w"], h, precision=hp)
        h = h + params["res_b"].reshape(1, -1, 1)
    return (h * m).astype(x.dtype)


if __name__ == "__main__":
    B, C, FILT, COUT, T, N_LAYERS = 2, 4, 8, 6, 16, 2
    keys = iter(jax.random.split(jax.random.PRNGKey(0), 64))

    def rnd(shape, scale=0.3):
        return (scale * jax.random.normal(next(keys), shape)).astype(jnp.float32)

    x = jax.random.normal(next(keys), (B, C, T), dtype=jnp.float32)
    lengths = jnp.array([T, T - 5])
    x_mask = (jnp.arange(T)[None, None, :] < lengths[:, None, None]).astype(jnp.float32)

    layers = []
    for _ in range(N_LAYERS):
        layers.append(dict(
            dw_w=rnd((C, KSIZE)), dw_b=rnd((C, 1)),
            gamma=(1.0 + rnd((C, 1), 0.1)), beta=rnd((C, 1), 0.1),
            w1=rnd((FILT, C)), b1=rnd((FILT, 1)),
            w2=rnd((C, FILT)), b2=rnd((C, 1)),
        ))
    params = dict(layers=layers, res_w=rnd((COUT, C)), res_b=rnd((COUT, 1)))

    out = convnext_forward(x, x_mask, params, eps=1e-5)
    out = jax.block_until_ready(out)

    ref = convnext_forward_ref(x, x_mask, params, eps=1e-5)
    assert out.shape == (B, COUT, T)
    assert jnp.allclose(out, ref, atol=2e-3, rtol=2e-3), \
        float(jnp.max(jnp.abs(out - ref)))

    print("KERNEL_OK")
</pallas_src>

<mosaic_0001>
module attributes {stable_mosaic.version = 11 : i64} {
  func.func @_convnext_block_kernel(%arg0: i32, %arg1: i32, %arg2: memref<1x4x128xf32, #tpu.memory_space<vmem>>, %arg3: memref<1x4x128xf32, #tpu.memory_space<vmem>>, %arg4: memref<1x4x128xf32, #tpu.memory_space<vmem>>, %arg5: memref<1x1x128xf32, #tpu.memory_space<vmem>>, %arg6: memref<4x7xf32, #tpu.memory_space<vmem>>, %arg7: memref<4x1xf32, #tpu.memory_space<vmem>>, %arg8: memref<4x1xf32, #tpu.memory_space<vmem>>, %arg9: memref<4x1xf32, #tpu.memory_space<vmem>>, %arg10: memref<8x4xf32, #tpu.memory_space<vmem>>, %arg11: memref<8x1xf32, #tpu.memory_space<vmem>>, %arg12: memref<4x8xf32, #tpu.memory_space<vmem>>, %arg13: memref<4x1xf32, #tpu.memory_space<vmem>>, %arg14: memref<1x4x128xf32, #tpu.memory_space<vmem>>, %arg15: memref<4x384xf32, #tpu.memory_space<vmem>>) attributes {dimension_semantics = [#tpu.dimension_semantics<parallel>, #tpu.dimension_semantics<parallel>], iteration_bounds = array<i64: 2, 1>, scalar_prefetch = 0 : i64, scratch_operands = 1 : i64, tpu.core_type = #tpu.core_type<tc>, window_params = [{transform_indices = @transform_0, window_bounds = array<i64: 1, 4, 128>}, {transform_indices = @transform_1, window_bounds = array<i64: 1, 4, 128>}, {transform_indices = @transform_2, window_bounds = array<i64: 1, 4, 128>}, {transform_indices = @transform_3, window_bounds = array<i64: 1, 1, 128>}, {pipeline_mode = #tpu.pipeline_mode<synchronous>, transform_indices = @transform_4, window_bounds = array<i64: 4, 7>}, {pipeline_mode = #tpu.pipeline_mode<synchronous>, transform_indices = @transform_5, window_bounds = array<i64: 4, 1>}, {pipeline_mode = #tpu.pipeline_mode<synchronous>, transform_indices = @transform_6, window_bounds = array<i64: 4, 1>}, {pipeline_mode = #tpu.pipeline_mode<synchronous>, transform_indices = @transform_7, window_bounds = array<i64: 4, 1>}, {pipeline_mode = #tpu.pipeline_mode<synchronous>, transform_indices = @transform_8, window_bounds = array<i64: 8, 4>}, {pipeline_mode = #tpu.pipeline_mode<synchronous>, transform_indices = @transform_9, window_bounds = array<i64: 8, 1>}, {pipeline_mode = #tpu.pipeline_mode<synchronous>, transform_indices = @transform_10, window_bounds = array<i64: 4, 8>}, {pipeline_mode = #tpu.pipeline_mode<synchronous>, transform_indices = @transform_11, window_bounds = array<i64: 4, 1>}, {transform_indices = @transform_12, window_bounds = array<i64: 1, 4, 128>}]} {
    %c0 = arith.constant 0 : index
    %c0_0 = arith.constant 0 : index
    %c0_1 = arith.constant 0 : index
    %0 = vector.load %arg3[%c0, %c0_0, %c0_1] : memref<1x4x128xf32, #tpu.memory_space<vmem>>, vector<1x4x128xf32>
    %1 = vector.shape_cast %0 : vector<1x4x128xf32> to vector<4x128xf32>
    %c0_2 = arith.constant 0 : index
    %c0_3 = arith.constant 0 : index
    %c0_4 = arith.constant 0 : index
    %2 = vector.load %arg5[%c0_2, %c0_3, %c0_4] : memref<1x1x128xf32, #tpu.memory_space<vmem>>, vector<1x1x128xf32>
    %3 = vector.shape_cast %2 : vector<1x1x128xf32> to vector<1x128xf32>
    %c0_5 = arith.constant 0 : index
    %c0_6 = arith.constant 0 : index
    %c0_7 = arith.constant 0 : index
    %4 = vector.load %arg2[%c0_5, %c0_6, %c0_7] : memref<1x4x128xf32, #tpu.memory_space<vmem>>, vector<1x4x128xf32>
    %5 = vector.shape_cast %4 : vector<1x4x128xf32> to vector<4x128xf32>
    %c0_8 = arith.constant 0 : index
    %c0_9 = arith.constant 0 : index
    %c0_10 = arith.constant 0 : index
    %6 = vector.load %arg4[%c0_8, %c0_9, %c0_10] : memref<1x4x128xf32, #tpu.memory_space<vmem>>, vector<1x4x128xf32>
    %7 = vector.shape_cast %6 : vector<1x4x128xf32> to vector<4x128xf32>
    %c0_i32 = arith.constant 0 : i32
    %8 = arith.cmpi eq, %arg1, %c0_i32 : i32
    %cst = arith.constant 0.000000e+00 : f32
    %9 = vector.broadcast %cst : f32 to vector<4x128xf32>
    %10 = arith.select %8, %9, %5 : vector<4x128xf32>
    %c0_i32_11 = arith.constant 0 : i32
    %11 = arith.cmpi eq, %arg1, %c0_i32_11 : i32
    %cst_12 = arith.constant 0.000000e+00 : f32
    %12 = vector.broadcast %cst_12 : f32 to vector<4x128xf32>
    %13 = arith.select %11, %12, %7 : vector<4x128xf32>
    %c0_13 = arith.constant 0 : index
    %c0_14 = arith.constant 0 : index
    %14 = vector.load %arg15[%c0_13, %c0_14] : memref<4x384xf32, #tpu.memory_space<vmem>>, vector<4x128xf32>
    tpu.vector_store %arg15[%c0_13, %c0_14], %10 {strides = array<i32>} : memref<4x384xf32, #tpu.memory_space<vmem>>, vector<4x128xf32>,
    %c0_15 = arith.constant 0 : index
    %c128 = arith.constant 128 : index
    %15 = vector.load %arg15[%c0_15, %c128] : memref<4x384xf32, #tpu.memory_space<vmem>>, vector<4x128xf32>
    tpu.vector_store %arg15[%c0_15, %c128], %1 {strides = array<i32>} : memref<4x384xf32, #tpu.memory_space<vmem>>, vector<4x128xf32>,
    %c0_16 = arith.constant 0 : index
    %c256 = arith.constant 256 : index
    %16 = vector.load %arg15[%c0_16, %c256] : memref<4x384xf32, #tpu.memory_space<vmem>>, vector<4x128xf32>
    tpu.vector_store %arg15[%c0_16, %c256], %13 {strides = array<i32>} : memref<4x384xf32, #tpu.memory_space<vmem>>, vector<4x128xf32>,
    %c0_17 = arith.constant 0 : index
    %c0_18 = arith.constant 0 : index
    %17 = vector.load %arg6[%c0_17, %c0_18] : memref<4x7xf32, #tpu.memory_space<vmem>>, vector<4x7xf32>
    %cst_19 = arith.constant 0.000000e+00 : f32
    %18 = vector.broadcast %cst_19 : f32 to vector<4x128xf32>
    %19 = vector.extract_strided_slice %17 {offsets = [0, 0], sizes = [4, 1], strides = [1, 1]} : vector<4x7xf32> to vector<4x1xf32>
    %c0_20 = arith.constant 0 : index
    %c125 = arith.constant 125 : index
    %20 = vector.load %arg15[%c0_20, %c125] : memref<4x384xf32, #tpu.memory_space<vmem>>, vector<4x128xf32>
    %21 = vector.broadcast %19 : vector<4x1xf32> to vector<4x128xf32>
    %22 = arith.mulf %21, %20 : vector<4x128xf32>
    %23 = arith.addf %18, %22 : vector<4x128xf32>
    %24 = vector.extract_strided_slice %17 {offsets = [0, 1], sizes = [4, 1], strides = [1, 1]} : vector<4x7xf32> to vector<4x1xf32>
    %c0_21 = arith.constant 0 : index
    %c126 = arith.constant 126 : index
    %25 = vector.load %arg15[%c0_21, %c126] : memref<4x384xf32, #tpu.memory_space<vmem>>, vector<4x128xf32>
    %26 = vector.broadcast %24 : vector<4x1xf32> to vector<4x128xf32>
    %27 = arith.mulf %26, %25 : vector<4x128xf32>
    %28 = arith.addf %23, %27 : vector<4x128xf32>
    %29 = vector.extract_strided_slice %17 {offsets = [0, 2], sizes = [4, 1], strides = [1, 1]} : vector<4x7xf32> to vector<4x1xf32>
    %c0_22 = arith.constant 0 : index
    %c127 = arith.constant 127 : index
    %30 = vector.load %arg15[%c0_22, %c127] : memref<4x384xf32, #tpu.memory_space<vmem>>, vector<4x128xf32>
    %31 = vector.broadcast %29 : vector<4x1xf32> to vector<4x128xf32>
    %32 = arith.mulf %31, %30 : vector<4x128xf32>
    %33 = arith.addf %28, %32 : vector<4x128xf32>
    %34 = vector.extract_strided_slice %17 {offsets = [0, 3], sizes = [4, 1], strides = [1, 1]} : vector<4x7xf32> to vector<4x1xf32>
    %c0_23 = arith.constant 0 : index
    %c128_24 = arith.constant 128 : index
    %35 = vector.load %arg15[%c0_23, %c128_24] : memref<4x384xf32, #tpu.memory_space<vmem>>, vector<4x128xf32>
    %36 = vector.broadcast %34 : vector<4x1xf32> to vector<4x128xf32>
    %37 = arith.mulf %36, %35 : vector<4x128xf32>
    %38 = arith.addf %33, %37 : vector<4x128xf32>
    %39 = vector.extract_strided_slice %17 {offsets = [0, 4], sizes = [4, 1], strides = [1, 1]} : vector<4x7xf32> to vector<4x1xf32>
    %c0_25 = arith.constant 0 : index
    %c129 = arith.constant 129 : index
    %40 = vector.load %arg15[%c0_25, %c129] : memref<4x384xf32, #tpu.memory_space<vmem>>, vector<4x128xf32>
    %41 = vector.broadcast %39 : vector<4x1xf32> to vector<4x128xf32>
    %42 = arith.mulf %41, %40 : vector<4x128xf32>
    %43 = arith.addf %38, %42 : vector<4x128xf32>
    %44 = vector.extract_strided_slice %17 {offsets = [0, 5], sizes = [4, 1], strides = [1, 1]} : vector<4x7xf32> to vector<4x1xf32>
    %c0_26 = arith.constant 0 : index
    %c130 = arith.constant 130 : index
    %45 = vector.load %arg15[%c0_26, %c130] : memref<4x384xf32, #tpu.memory_space<vmem>>, vector<4x128xf32>
    %46 = vector.broadcast %44 : vector<4x1xf32> to vector<4x128xf32>
    %47 = arith.mulf %46, %45 : vector<4x128xf32>
    %48 = arith.addf %43, %47 : vector<4x128xf32>
    %49 = vector.extract_strided_slice %17 {offsets = [0, 6], sizes = [4, 1], strides = [1, 1]} : vector<4x7xf32> to vector<4x1xf32>
    %c0_27 = arith.constant 0 : index
    %c131 = arith.constant 131 : index
    %50 = vector.load %arg15[%c0_27, %c131] : memref<4x384xf32, #tpu.memory_space<vmem>>, vector<4x128xf32>
    %51 = vector.broadcast %49 : vector<4x1xf32> to vector<4x128xf32>
    %52 = arith.mulf %51, %50 : vector<4x128xf32>
    %53 = arith.addf %48, %52 : vector<4x128xf32>
    %c0_28 = arith.constant 0 : index
    %c0_29 = arith.constant 0 : index
    %54 = vector.load %arg7[%c0_28, %c0_29] : memref<4x1xf32, #tpu.memory_space<vmem>>, vector<4x1xf32>
    %55 = vector.broadcast %54 : vector<4x1xf32> to vector<4x128xf32>
    %56 = arith.addf %53, %55 : vector<4x128xf32>
    %57 = vector.broadcast %3 : vector<1x128xf32> to vector<4x128xf32>
    %58 = arith.mulf %56, %57 : vector<4x128xf32>
    %cst_30 = arith.constant dense<0.000000e+00> : vector<128xf32>
    %59 = vector.multi_reduction <add>, %58, %cst_30 [0] : vector<4x128xf32> to vector<128xf32>
    %60 = vector.shape_cast %59 : vector<128xf32> to vector<1x128xf32>
    %cst_31 = arith.constant 4.000000e+00 : f32
    %61 = vector.broadcast %cst_31 : f32 to vector<1x128xf32>
    %62 = arith.divf %60, %61 : vector<1x128xf32>
    %63 = vector.broadcast %62 : vector<1x128xf32> to vector<4x128xf32>
    %64 = arith.subf %58, %63 : vector<4x128xf32>
    %65 = arith.mulf %64, %64 : vector<4x128xf32>
    %cst_32 = arith.constant dense<0.000000e+00> : vector<128xf32>
    %66 = vector.multi_reduction <add>, %65, %cst_32 [0] : vector<4x128xf32> to vector<128xf32>
    %67 = vector.shape_cast %66 : vector<128xf32> to vector<1x128xf32>
    %cst_33 = arith.constant 4.000000e+00 : f32
    %68 = vector.broadcast %cst_33 : f32 to vector<1x128xf32>
    %69 = arith.divf %67, %68 : vector<1x128xf32>
    %70 = vector.broadcast %62 : vector<1x128xf32> to vector<4x128xf32>
    %71 = arith.subf %58, %70 : vector<4x128xf32>
    %cst_34 = arith.constant 9.99999974E-6 : f32
    %72 = vector.broadcast %cst_34 : f32 to vector<1x128xf32>
    %73 = arith.addf %69, %72 : vector<1x128xf32>
    %74 = math.rsqrt %73 : vector<1x128xf32>
    %75 = vector.broadcast %74 : vector<1x128xf32> to vector<4x128xf32>
    %76 = arith.mulf %71, %75 : vector<4x128xf32>
    %c0_35 = arith.constant 0 : index
    %c0_36 = arith.constant 0 : index
    %77 = vector.load %arg8[%c0_35, %c0_36] : memref<4x1xf32, #tpu.memory_space<vmem>>, vector<4x1xf32>
    %78 = vector.broadcast %77 : vector<4x1xf32> to vector<4x128xf32>
    %79 = arith.mulf %76, %78 : vector<4x128xf32>
    %c0_37 = arith.constant 0 : index
    %c0_38 = arith.constant 0 : index
    %80 = vector.load %arg9[%c0_37, %c0_38] : memref<4x1xf32, #tpu.memory_space<vmem>>, vector<4x1xf32>
    %81 = vector.broadcast %80 : vector<4x1xf32> to vector<4x128xf32>
    %82 = arith.addf %79, %81 : vector<4x128xf32>
    %c0_39 = arith.constant 0 : index
    %c0_40 = arith.constant 0 : index
    %83 = vector.load %arg10[%c0_39, %c0_40] : memref<8x4xf32, #tpu.memory_space<vmem>>, vector<8x4xf32>
    %cst_41 = arith.constant dense<0.000000e+00> : vector<8x128xf32>
    %84 = tpu.matmul %83, %82, %cst_41 {dimension_numbers = #tpu.dot_dimension_numbers<[1], [0], [0], [1], [0, 0, 1, 1], [], []>} : vector<8x4xf32>, vector<4x128xf32>, vector<8x128xf32> -> vector<8x128xf32>
    %c0_42 = arith.constant 0 : index
    %c0_43 = arith.constant 0 : index
    %85 = vector.load %arg11[%c0_42, %c0_43] : memref<8x1xf32, #tpu.memory_space<vmem>>, vector<8x1xf32>
    %86 = vector.broadcast %85 : vector<8x1xf32> to vector<8x128xf32>
    %87 = arith.addf %84, %86 : vector<8x128xf32>
    %88 = arith.mulf %87, %87 : vector<8x128xf32>
    %89 = arith.mulf %87, %88 : vector<8x128xf32>
    %cst_44 = arith.constant 4.471500e-02 : f32
    %90 = vector.broadcast %cst_44 : f32 to vector<8x128xf32>
    %91 = arith.mulf %90, %89 : vector<8x128xf32>
    %92 = arith.addf %87, %91 : vector<8x128xf32>
    %cst_45 = arith.constant 0.797884583 : f32
    %93 = vector.broadcast %cst_45 : f32 to vector<8x128xf32>
    %94 = arith.mulf %93, %92 : vector<8x128xf32>
    %95 = math.tanh %94 : vector<8x128xf32>
    %cst_46 = arith.constant 1.000000e+00 : f32
    %96 = vector.broadcast %cst_46 : f32 to vector<8x128xf32>
    %97 = arith.addf %96, %95 : vector<8x128xf32>
    %cst_47 = arith.constant 5.000000e-01 : f32
    %98 = vector.broadcast %cst_47 : f32 to vector<8x128xf32>
    %99 = arith.mulf %98, %97 : vector<8x128xf32>
    %100 = arith.mulf %87, %99 : vector<8x128xf32>
    %c0_48 = arith.constant 0 : index
    %c0_49 = arith.constant 0 : index
    %101 = vector.load %arg12[%c0_48, %c0_49] : memref<4x8xf32, #tpu.memory_space<vmem>>, vector<4x8xf32>
    %cst_50 = arith.constant dense<0.000000e+00> : vector<4x128xf32>
    %102 = tpu.matmul %101, %100, %cst_50 {dimension_numbers = #tpu.dot_dimension_numbers<[1], [0], [0], [1], [0, 0, 1, 1], [], []>} : vector<4x8xf32>, vector<8x128xf32>, vector<4x128xf32> -> vector<4x128xf32>
    %c0_51 = arith.constant 0 : index
    %c0_52 = arith.constant 0 : index
    %103 = vector.load %arg13[%c0_51, %c0_52] : memref<4x1xf32, #tpu.memory_space<vmem>>, vector<4x1xf32>
    %104 = vector.broadcast %103 : vector<4x1xf32> to vector<4x128xf32>
    %105 = arith.addf %102, %104 : vector<4x128xf32>
    %106 = arith.addf %105, %1 : vector<4x128xf32>
    %107 = vector.broadcast %3 : vector<1x128xf32> to vector<4x128xf32>
    %108 = arith.mulf %106, %107 : vector<4x128xf32>
    %c0_53 = arith.constant 0 : index
    %c0_54 = arith.constant 0 : index
    %c0_55 = arith.constant 0 : index
    %109 = vector.load %arg14[%c0_53, %c0_54, %c0_55] : memref<1x4x128xf32, #tpu.memory_space<vmem>>, vector<1x4x128xf32>
    %110 = vector.shape_cast %109 : vector<1x4x128xf32> to vector<4x128xf32>
    %111 = vector.shape_cast %108 : vector<4x128xf32> to vector<1x4x128xf32>
    tpu.vector_store %arg14[%c0_53, %c0_54, %c0_55], %111 {strides = array<i32>} : memref<1x4x128xf32, #tpu.memory_space<vmem>>, vector<1x4x128xf32>,
    return
  }
  func.func @transform_0(%arg0: i32, %arg1: i32) -> (i32, i32, i32) {
    %c1_i32 = arith.constant 1 : i32
    %0 = arith.subi %arg1, %c1_i32 : i32
    %c0_i32 = arith.constant 0 : i32
    %1 = arith.maxsi %0, %c0_i32 : i32
    %c0_i32_0 = arith.constant 0 : i32
    %c0_i32_1 = arith.constant 0 : i32
    return %arg0, %c0_i32_0, %1 : i32, i32, i32
  }
  func.func @transform_1(%arg0: i32, %arg1: i32) -> (i32, i32, i32) {
    %c0_i32 = arith.constant 0 : i32
    %c0_i32_0 = arith.constant 0 : i32
    return %arg0, %c0_i32, %arg1 : i32, i32, i32
  }
  func.func @transform_2(%arg0: i32, %arg1: i32) -> (i32, i32, i32) {
    %c1_i32 = arith.constant 1 : i32
    %0 = arith.addi %arg1, %c1_i32 : i32
    %c0_i32 = arith.constant 0 : i32
    %1 = arith.minsi %0, %c0_i32 : i32
    %c0_i32_0 = arith.constant 0 : i32
    %c0_i32_1 = arith.constant 0 : i32
    return %arg0, %c0_i32_0, %1 : i32, i32, i32
  }
  func.func @transform_3(%arg0: i32, %arg1: i32) -> (i32, i32, i32) {
    %c0_i32 = arith.constant 0 : i32
    %c0_i32_0 = arith.constant 0 : i32
    return %arg0, %c0_i32, %arg1 : i32, i32, i32
  }
  func.func @transform_4(%arg0: i32, %arg1: i32) -> (i32, i32) {
    %c0_i32 = arith.constant 0 : i32
    %c0_i32_0 = arith.constant 0 : i32
    %c0_i32_1 = arith.constant 0 : i32
    return %c0_i32, %c0_i32_0 : i32, i32
  }
  func.func @transform_5(%arg0: i32, %arg1: i32) -> (i32, i32) {
    %c0_i32 = arith.constant 0 : i32
    %c0_i32_0 = arith.constant 0 : i32
    %c0_i32_1 = arith.constant 0 : i32
    return %c0_i32, %c0_i32_0 : i32, i32
  }
  func.func @transform_6(%arg0: i32, %arg1: i32) -> (i32, i32) {
    %c0_i32 = arith.constant 0 : i32
    %c0_i32_0 = arith.constant 0 : i32
    %c0_i32_1 = arith.constant 0 : i32
    return %c0_i32, %c0_i32_0 : i32, i32
  }
  func.func @transform_7(%arg0: i32, %arg1: i32) -> (i32, i32) {
    %c0_i32 = arith.constant 0 : i32
    %c0_i32_0 = arith.constant 0 : i32
    %c0_i32_1 = arith.constant 0 : i32
    return %c0_i32, %c0_i32_0 : i32, i32
  }
  func.func @transform_8(%arg0: i32, %arg1: i32) -> (i32, i32) {
    %c0_i32 = arith.constant 0 : i32
    %c0_i32_0 = arith.constant 0 : i32
    %c0_i32_1 = arith.constant 0 : i32
    return %c0_i32, %c0_i32_0 : i32, i32
  }
  func.func @transform_9(%arg0: i32, %arg1: i32) -> (i32, i32) {
    %c0_i32 = arith.constant 0 : i32
    %c0_i32_0 = arith.constant 0 : i32
    %c0_i32_1 = arith.constant 0 : i32
    return %c0_i32, %c0_i32_0 : i32, i32
  }
  func.func @transform_10(%arg0: i32, %arg1: i32) -> (i32, i32) {
    %c0_i32 = arith.constant 0 : i32
    %c0_i32_0 = arith.constant 0 : i32
    %c0_i32_1 = arith.constant 0 : i32
    return %c0_i32, %c0_i32_0 : i32, i32
  }
  func.func @transform_11(%arg0: i32, %arg1: i32) -> (i32, i32) {
    %c0_i32 = arith.constant 0 : i32
    %c0_i32_0 = arith.constant 0 : i32
    %c0_i32_1 = arith.constant 0 : i32
    return %c0_i32, %c0_i32_0 : i32, i32
  }
  func.func @transform_12(%arg0: i32, %arg1: i32) -> (i32, i32, i32) {
    %c0_i32 = arith.constant 0 : i32
    %c0_i32_0 = arith.constant 0 : i32
    return %arg0, %c0_i32, %arg1 : i32, i32, i32
  }
}

</mosaic_0001>

<bundles_post_ra>
// kernel: tpu_custom_call.1
= control target key start
LH: loop header
LB: loop body
LE: loop exit
PB: predicated region body
PF: predicated region fallthrough
CT: control target
= control target key end

     0   :  { %s1458_s0 = inlined_call_operand.vmem [shape: f32[2,4,128], index: 0, kind: input, shape index: {}]   ;;  %s1459_s1 = inlined_call_operand.vmem [shape: f32[2,4,128], index: 1, kind: input, shape index: {}]   ;;  %s1460_s2 = inlined_call_operand.vmem [shape: f32[2,4,128], index: 2, kind: input, shape index: {}]   ;;  %s1461_s3 = inlined_call_operand.vmem [shape: f32[2,1,128], index: 3, kind: input, shape index: {}]   ;;  %s1462_s4 = inlined_call_operand.vmem [shape: f32[4,7], index: 4, kind: input, shape index: {}]   ;;  %s1463_s5 = inlined_call_operand.vmem [shape: f32[4,1], index: 5, kind: input, shape index: {}]   ;;  %s1464_s6 = inlined_call_operand.vmem [shape: f32[4,1], index: 6, kind: input, shape index: {}]   ;;  %s1465_s7 = inlined_call_operand.vmem [shape: f32[4,1], index: 7, kind: input, shape index: {}]   ;;  %s1466_s8 = inlined_call_operand.vmem [shape: f32[8,4], index: 8, kind: input, shape index: {}]   ;;  %s1467_s9 = inlined_call_operand.vmem [shape: f32[8,1], index: 9, kind: input, shape index: {}]   ;;  %s1468_s10 = inlined_call_operand.vmem [shape: f32[4,8], index: 10, kind: input, shape index: {}]   ;;  %s1469_s11 = inlined_call_operand.vmem [shape: f32[4,1], index: 11, kind: input, shape index: {}]   ;;  %s1470_s12 = inlined_call_operand.hbm [shape: f32[2,4,128], index: 12, kind: output, shape index: {}]  }
   0x1   :  { %1471 = sst [smem:[#allocation6_spill]] %s1459_s1 }
   0x2   :  { %17 = vsyncpa [#allocation4], 0 }
   0x3   :  { %19 = vsyncpa [#allocation4 + $0x1], 0  ;;  %s1308_s19 = smov 0   ;;  %s1310_s20 = smov 0  }
   0x4   :  { %s1312_s21 = smov 0   ;;  %s1314_s22 = smov 0  }
   0x5   :  { %s1316_s23 = smov 0   ;;  %s1318_s24 = smov 0  }
   0x6 LB: > { %s1031_s25 = sadd.s32 4294967295, %s1225_s24   ;;  %s1032_s26 = sadd.s32 4294967294, %s1225_s24   ;;  %s1225_s24 = sphi %s1318_s24, %s25_s24   ;;  %s1221_s23 = sphi %s1316_s23, %s1479_s23   ;;  %s1217_s22 = sphi %s1314_s22, %s1478_s22   ;;  %s1213_s21 = sphi %s1312_s21, %s1477_s21   ;;  %s1209_s20 = sphi %s1310_s20, %s1476_s20   ;;  %s1205_s19 = sphi %s1308_s19, %s1475_s19  }
   0x7   : > { %s37_s27 = sadd.s32 1, %s1221_s23  ;;  %s338_s0 = sadd.s32 1, %s1213_s21 }
   0x8   : > { %p39_p0 = scmp.ge.s32.totalorder %s37_s27, 2  ;;  %p348_p1 = scmp.ne.s32.totalorder %s1213_s21, %s1209_s20 }
   0x9   : > { %p349_p2 = scmp.eq.s32.totalorder %s1031_s25, 1  ;;  %p354_p3 = scmp.ne.s32.totalorder %s1209_s20, %s1205_s19 }
   0xa   : > { %s1481_s27 = smov (%p39_p0, %s37_s27), 0  ;;  %p355_p5 = scmp.eq.s32.totalorder %s1032_s26, 1 }
   0xb   : > { %p1348_p4 = por %p349_p2, %p348_p1  ;;  %s333_s29 = ssub.s32 %s1221_s23, %s1481_s27 }
   0xc   : > { %p1035_p6 = scmp.ge.s32.totalorder %s1225_s24, 1  ;;  %p336_p7 = scmp.eq.s32.totalorder %s333_s29, 0 }
   0xd   : > { %p1355_p8 = por %p355_p5, %p354_p3  ;;  %p448_p9 = scmp.lt.s32.totalorder %s1225_s24, 3 }
   0xe   : > { %s1361_s2 = scalar_select %p336_p7, %s1213_s21, %s338_s0  }
   0xf   : > { %p449_p10 = pnand %p1035_p6, %p448_p9 }
  0x10   : > { %v570_v0 = vld [vmem:[%s1462_s4] sm:$0xf] (!%p449_p10)  ;;  %v1227_v1 = vmov (!%p449_p10), 2   ;;  %v1228_v2 = vmov (!%p449_p10), 0   ;;  %p531_p11 = scmp.lt.s32.totalorder (!%p449_p10), %s1217_s22, 1  ;;  %v1229_v3 = vmov (!%p449_p10), 0.0  }
  0x11   : > { %452 = sbr.rel (%p449_p10) target bundleno = 734 (0x2de), region = 68  ;;  %1134 = vset.pattern.permute.xlu1 (!%p449_p10), %v1227_v1  ;;  %1132 = vset.pattern.permute.xlu0 (!%p449_p10), %v1228_v2  ;;  %567 = vst [vmem:[#allocation2] sm:$0xf] (!%p449_p10), %v1229_v3  ;;  %569 = vst [vmem:[#allocation2 + $0x8] sm:$0xf] (!%p449_p10), %v1229_v3  ;;  %v1230_v4 = vmov (!%p449_p10), 3  }
  0x12   : > { %606 = vperm.xlu1 (!%p449_p10), %1134, %v570_v0   ;;  %574 = vperm.xlu0 (!%p449_p10), %1132, %v570_v0   ;;  %v1231_v5 = vmov (!%p449_p10), 1   ;;  %s1474_s1 = sld [smem:[#allocation6_spill]] (!%p449_p10)  ;;  %v1232_v7 = vmov (!%p449_p10), 4   ;;  %v1233_v8 = vmov (!%p449_p10), 5   ;;  %s1234_s26 = smov (!%p449_p10), 3   ;;  %v1237_v11 = vmov (!%p449_p10), 6  }
  0x13   : > { %1052 = vmatprep.subr.mxu0 (!%p449_p10), %v1229_v3  ;;  %1057 = vmatprep.subr.mxu1 (!%p449_p10), %v1229_v3  ;;  %s1235_s0 = smov (!%p449_p10), 2   ;;  %s1236_s29 = smov (!%p449_p10), 1   ;;  %v675_v14 = vld [vmem:[%s1463_s5] sm:$0xf] (!%p449_p10)  ;;  %vm1241_vm0 = vmmov (!%p449_p10), 0   ;;  %vm599_vm1 = vcmask (!%p449_p10), 15360  }
  0x14   : > { %s1238_s13 = smov (!%p449_p10), 127   ;;  %s1239_s14 = smov (!%p449_p10), 126   ;;  %v712_v15 = vld [vmem:[%s1464_s6] sm:$0xf] (!%p449_p10)  ;;  %1054 = vmatprep.mubr.msk.f32.mxu0 (!%p449_p10), %vm1241_vm0, %v1229_v3  ;;  %1059 = vmatprep.mubr.msk.f32.mxu1 (!%p449_p10), %vm1241_vm0, %v1229_v3  ;;  %vm583_vm2 = vcmask (!%p449_p10), 23552   ;;  %vm615_vm3 = vcmask (!%p449_p10), 7168  }
  0x15   : > { %s1240_s18 = smov (!%p449_p10), 125   ;;  %v820_v16 = vld [vmem:[%s1469_s11] sm:$0xf] (!%p449_p10)  ;;  %vm638_vm4 = vcmask (!%p449_p10), 1039360   ;;  %vm654_vm5 = vcmask (!%p449_p10), 1031168   ;;  %vm670_vm6 = vcmask (!%p449_p10), 1022976  }
  0x16   : > { %1135 = vset.pattern.permute.xlu1 (!%p449_p10), %v1230_v4  ;;  %1133 = vset.pattern.permute.xlu0 (!%p449_p10), %v1231_v5  ;;  %v719_v17 = vld [vmem:[%s1465_s7] sm:$0xf] (!%p449_p10)  ;;  %vm689_vm7 = vcmask (!%p449_p10), 1043456   ;;  %vm733_vm8 = vcmask (!%p449_p10), 31744   ;;  %vm826_vm9 = vcmask (!%p449_p10), 64512  }
  0x17   : > { %622 = vperm.xlu1 (!%p449_p10), %1135, %v570_v0   ;;  %590 = vperm.xlu0 (!%p449_p10), %1133, %v570_v0   ;;  %v727_v18 = vld [vmem:[%s1467_s9] sm:$0xff] (!%p449_p10) }
  0x18   : > { %s1368_s15 = scalar_select %p531_p11, %s1217_s22, 1 }
  0x1a   : > { %s1038_s16 = sshll.u32 %s1368_s15, 2 }
  0x1b   : > { %s537_s25 = scalar_lea.vmem %s1474_s1, %s1038_s16  ;;  %1136 = vset.pattern.permute.xlu1 %v1232_v7  ;;  %1137 = vset.pattern.permute.xlu0 %v1233_v8 }
  0x1c   : > { %v1374_v6 = vld [vmem:[%s537_s25] sm:$0xf] }
  0x1d   : > { %568 = vst [vmem:[#allocation2 + $0x4] sm:$0xf] %v1374_v6 }
  0x24   : > { %v571_v9 = vld [vmem:[#allocation2] sm:$0xff] }
  0x25   : > { %579 = vrot.lane.b32.xlu1 %v571_v9, %s1234_s26  ;;  %v578_v10 = vcombine.high %v571_v9, %v571_v9  ;;  %v627_v12 = vld [vmem:[#allocation2 + $0x4] sm:$0xff] }
  0x26   : > { %v633_v13 = vcombine.high %v627_v12, %v627_v12  ;;  %v620_v43 = vld [vmem:[#allocation2 + $0x4] sm:$0xf] }
  0x27   : > { %581 = vrot.lane.b32.xlu0 %v578_v10, %s1234_s26 }
  0x29   : > { %595 = vrot.lane.b32.xlu1 %v571_v9, %s1235_s0 }
  0x2b   : > { %597 = vrot.lane.b32.xlu0 %v578_v10, %s1235_s0 }
  0x2d   : > { %629 = vperm.xlu1 %1136, %v570_v0  }
  0x2f   : > { %611 = vrot.lane.b32.xlu0 %v571_v9, %s1236_s29 }
  0x31   : > { %613 = vrot.lane.b32.xlu1 %v578_v10, %s1236_s29  ;;  %s515_s29 = sand.u32 1, %s1209_s20  }
  0x32   : > { %1138 = vset.pattern.permute.xlu1 %v1237_v11  ;;  %s904_s25 = scalar_lea.sflag [#allocation4], %s515_s29 }
  0x33   : > { %645 = vperm.xlu0 %1137, %v570_v0  }
  0x35   : > { %661 = vperm.xlu1 %1138, %v570_v0  }
  0x37   : > { %636 = vrot.lane.b32.xlu0 %v633_v13, %s1238_s13 }
  0x38   : > { %1140 = vset.pattern.permute.xlu0 %v1228_v2 }
  0x39   : > { %634 = vrot.lane.b32.xlu1 %v627_v12, %s1238_s13  ;;  %s1036_s13 = sshll.u32 %s515_s29, 2 }
  0x3a   : > { %1139 = vset.pattern.permute.xlu1 %v1228_v2  ;;  %s517_s16 = scalar_lea.vmem [#allocation3], %s1036_s13 }
  0x3b   : > { %652 = vrot.lane.b32.xlu0 %v633_v13, %s1239_s14  ;;  %s918_s1 = sshll.u32 %s517_s16, 4  ;;  %s1413_s1 = int_to_ptr.vmem [resolvable:$true] %s918_s1 }
  0x3c   : > { %s1147_s26 = scalar_lea.vmem %s1413_s1, 64 }
  0x3d   : > { %650 = vrot.lane.b32.xlu1 %v627_v12, %s1239_s14  ;;  %s1045_s14 = sshll.u32 %s1217_s22, 6  ;;  %p1148_p12 = scmp.ne.s32.totalorder %s1413_s1, %s1147_s26 }
  0x3e   : > { %s1242_s22 = smov [#allocation3]  }
  0x3f   : > { %666 = vrot.lane.b32.xlu0 %v627_v12, %s1240_s18  ;;  %p1149_p13 = pnand %p1148_p12, %p1348_p4  ;;  %s1151_s0 = sshll.u32 %s1242_s22, 4  ;;  %s1152_s0 = int_to_ptr.vmem [resolvable:$false] %s1151_s0 }
  0x40   : > { %s1153_s13 = scalar_lea.vmem %s1152_s0, 128  ;;  %p1154_p1 = scmp.lt.s32.totalorder %s1413_s1, %s1152_s0 }
  0x41   : > { %678 = vperm.xlu1 %1139, %v675_v14   ;;  %p1150_p0 = pneg %p1149_p13  ;;  %p1155_p2 = scmp.lt.s32.totalorder %s1153_s13, %s1147_s26 }
  0x43   : > { %715 = vperm.xlu0 %1140, %v712_v15   ;;  %p1156_p3 = por %p1155_p2, %p1154_p1 }
  0x45   : > { %668 = vrot.lane.b32.xlu1 %v633_v13, %s1240_s18  ;;  %s556_s18 = scalar_lea.vmem %s1461_s3, %s1368_s15  ;;  %s1411_s15 = scalar_lea.hbm %s1470_s12, %s1045_s14 }
  0x46   : > { %v1040_v59 = vld [vmem:[%s556_s18] ss:$0 sm:$0xff]  ;;  %p1157_p5 = pnand %p1156_p3, %p1150_p0 }
  0x47   : > { %823 = vperm.xlu0 %1140, %v820_v16  }
  0x49   : > { %722 = vperm.xlu1 %1139, %v719_v17  }
  0x4d   : > { %730 = vperm.xlu1 %1139, %v727_v18  }
  0x91   : > { %v607_v19 = vpop.permute.xlu1 %606  ;;  %v575_v20 = vpop.permute.xlu0 %574 }
  0x96   : > { %v623_v21 = vpop.permute.xlu1 %622  ;;  %v591_v22 = vpop.permute.xlu0 %590 }
  0x97   : > { %v625_v47 = vmul.f32 %v623_v21, %v620_v43 }
  0x9a   : > { %v580_v23 = vpop.permute.xlu1 %579  ;;  %v582_v24 = vpop.permute.xlu0 %581 }
  0x9b   : > { %v584_v34 = vsel %vm583_vm2, %v580_v23, %v582_v24  ;;  %v726_v24 = vld [vmem:[%s1466_s8] sm:$0xff] }
  0x9c   : > { %v586_v38 = vmul.f32 %v584_v34, %v575_v20 }
  0x9e   : > { %v596_v25 = vpop.permute.xlu1 %595  ;;  %v598_v26 = vpop.permute.xlu0 %597 }
  0x9f   : > { %v600_v32 = vsel %vm599_vm1, %v596_v25, %v598_v26 }
  0xa0   : > { %v602_v36 = vmul.f32 %v600_v32, %v591_v22 }
  0xa2   : > { %v612_v28 = vpop.permute.xlu0 %611  ;;  %v603_v40 = vadd.f32 %v602_v36, %v586_v38  ;;  %v819_v38 = vld [vmem:[%s1468_s10] sm:$0xf] }
  0xac   : > { %v630_v27 = vpop.permute.xlu1 %629 }
  0xb0   : > { %v614_v29 = vpop.permute.xlu1 %613 }
  0xb1   : > { %v616_v35 = vsel %vm615_vm3, %v612_v28, %v614_v29 }
  0xb2   : > { %v646_v30 = vpop.permute.xlu0 %645  ;;  %v618_v39 = vmul.f32 %v616_v35, %v607_v19 }
  0xb4   : > { %v662_v31 = vpop.permute.xlu1 %661  ;;  %v619_v45 = vadd.f32 %v618_v39, %v603_v40 }
  0xb6   : > { %v637_v33 = vpop.permute.xlu0 %636  ;;  %v626_v50 = vadd.f32 %v625_v47, %v619_v45 }
  0xb8   : > { %v635_v37 = vpop.permute.xlu1 %634 }
  0xb9   : > { %v639_v44 = vsel %vm638_vm4, %v635_v37, %v637_v33 }
  0xba   : > { %v653_v42 = vpop.permute.xlu0 %652  ;;  %v641_v48 = vmul.f32 %v639_v44, %v630_v27 }
  0xbc   : > { %v651_v41 = vpop.permute.xlu1 %650  ;;  %v642_v53 = vadd.f32 %v641_v48, %v626_v50 }
  0xbd   : > { %v655_v46 = vsel %vm654_vm5, %v651_v41, %v653_v42 }
  0xbe   : > { %v657_v51 = vmul.f32 %v655_v46, %v646_v30  ;;  %v667_v52 = vpop.permute.xlu0 %666 }
  0xc0   : > { %v679_v49 = vpop.permute.xlu1 %678  ;;  %v658_v56 = vadd.f32 %v657_v51, %v642_v53 }
  0xc2   : > { %v716_v20 = vpop.permute.xlu0 %715 }
  0xc4   : > { %v669_v54 = vpop.permute.xlu1 %668 }
  0xc5   : > { %v671_v55 = vsel %vm670_vm6, %v667_v52, %v669_v54 }
  0xc6   : > { %v673_v57 = vmul.f32 %v671_v55, %v662_v31  ;;  %v824_v39 = vpop.permute.xlu0 %823 }
  0xc8   : > { %v674_v58 = vadd.f32 %v673_v57, %v658_v56  ;;  %v723_v22 = vpop.permute.xlu1 %722 }
  0xca   : > { %v681_v60 = vadd.f32 %v679_v49, %v674_v58 }
  0xcc   : > { %v688_v61 = vmul.f32 %v1040_v59, %v681_v60  ;;  %v731_v25 = vpop.permute.xlu1 %730 }
  0xce   : > { %v690_v62 = vsel %vm689_vm7, %v688_v61, 0.0 }
  0xcf   : > { %v691_v63 = vrot.slane %v690_v62, 4 }
  0xd1   : > { %v692_v0 = vadd.f32 %v691_v63, %v690_v62 }
  0xd3   : > { %v693_v1 = vrot.slane %v692_v0, 2 }
  0xd5   : > { %v694_v2 = vadd.f32 %v693_v1, %v692_v0 }
  0xd7   : > { %v695_v3 = vrot.slane %v694_v2, 1 }
  0xd9   : > { %v696_v4 = vadd.f32 %v695_v3, %v694_v2 }
  0xdb   : > { %v698_v5 = vmul.f32 0.25, %v696_v4 }
  0xdd   : > { %v699_v7 = vsub.f32 %v688_v61, %v698_v5 }
  0xdf   : > { %v700_v8 = vmul.f32 %v699_v7, %v699_v7 }
  0xe1   : > { %v701_v9 = vsel %vm689_vm7, %v700_v8, 0.0 }
  0xe2   : > { %v702_v10 = vrot.slane %v701_v9, 4 }
  0xe4   : > { %v703_v11 = vadd.f32 %v702_v10, %v701_v9 }
  0xe6   : > { %v704_v12 = vrot.slane %v703_v11, 2 }
  0xe8   : > { %v705_v13 = vadd.f32 %v704_v12, %v703_v11 }
  0xea   : > { %v706_v14 = vrot.slane %v705_v13, 1 }
  0xec   : > { %v707_v15 = vadd.f32 %v706_v14, %v705_v13 }
  0xee   : > { %v708_v16 = vmul.f32 0.25, %v707_v15 }
  0xf0   : > { %v709_v17 = vadd.f32 1e-05, %v708_v16 }
  0xf2   : > { %1143 = vrsqrt.f32 %v709_v17 }
  0xfc   : > { %v1144_v18 = vpop.eup %1143 }
  0xfd   : > { %v711_v19 = vmul.f32 %v1144_v18, %v699_v7 }
  0xff   : > { %v718_v21 = vmul.f32 %v716_v20, %v711_v19 }
 0x101   : > { %v725_v23 = vadd.f32 %v723_v22, %v718_v21 }
 0x103   : > { %1053 = vmatpush3.msk.msra.mxu0 %vm689_vm7, %v725_v23 }
 0x104   : > { %1055 = vmatmul.mubr.msk.f32.vlgmr.msra.gmra.mrb[0].mxu0 %vm733_vm8, %v726_v24 }
 0x1d7   : > { %v806_v26 = vpop.f32.mrb[0].mxu0 }
 0x1d8   : > { %v807_v27 = vadd.f32 %v806_v26, %v731_v25  ;;  %v1056_v28 = vpop.f32.mrb[1].mxu0 }
 0x1da   : > { %v810_v29 = vmul.f32 %v807_v27, %v807_v27 }
 0x1dc   : > { %v811_v30 = vmul.f32 %v810_v29, %v807_v27 }
 0x1de   : > { %v812_v31 = vmul.f32 0.044715, %v811_v30 }
 0x1e0   : > { %v813_v32 = vadd.f32 %v812_v31, %v807_v27 }
 0x1e2   : > { %v814_v33 = vmul.f32 0.7978846, %v813_v32 }
 0x1e4   : > { %1145 = vtanh.f32 %v814_v33 }
 0x1ee   : > { %v1146_v34 = vpop.eup %1145 }
 0x1ef   : > { %v816_v35 = vadd.f32 1.0, %v1146_v34 }
 0x1f1   : > { %v817_v36 = vmul.f32 0.5, %v816_v35 }
 0x1f3   : > { %v818_v37 = vmul.f32 %v817_v36, %v807_v27 }
 0x1f5   : > { %1058 = vmatpush3.msra.mxu1 %v818_v37 }
 0x1f6   : > { %1060 = vmatmul.mubr.msk.f32.vlgmr.msra.gmra.mrb[0].mxu1 %vm826_vm9, %v819_v38 }
 0x2c9   : > { %v896_v40 = vpop.f32.mrb[0].mxu1 }
 0x2ca   : > { %v897_v41 = vadd.f32 %v896_v40, %v824_v39  ;;  %v1061_v42 = vpop.f32.mrb[1].mxu1 }
 0x2cc   : > { %v900_v43 = vadd.f32 %v897_v41, %v1374_v6 }
 0x2ce   : > { %v901_v44 = vmul.f32 %v1040_v59, %v900_v43 }
 0x2d0   : > { %902 = vst [vmem:[%s517_s16] sm:$0xf] %v901_v44 }
 0x2d1   : > { %1160 = shalt.err (!%p1157_p5)
}
 0x2d2   : > { %s1161_s29 = scalar_lea.hbm %s1411_s15, 64  ;;  %s1165_s17 = scalar_lea.hbm %s1470_s12, 128 }
 0x2d3   : > { %p1162_p6 = scmp.ne.s32.totalorder %s1411_s15, %s1161_s29  ;;  %p1166_p10 = scmp.lt.u32.totalorder %s1411_s15, %s1470_s12 }
 0x2d4   : > { %p1167_p11 = scmp.lt.u32.totalorder %s1165_s17, %s1161_s29  ;;  %p1169_p13 = scmp.lt.u32.totalorder %s1161_s29, %s1411_s15 }
 0x2d5   : > { %p1163_p7 = pnand %p1162_p6, %p1348_p4 }
 0x2d6   : > { %p1168_p12 = por %p1167_p11, %p1166_p10 }
 0x2d7   : > { %p1164_p9 = pneg %p1163_p7 }
 0x2d8   : > { %p1170_p0 = por %p1169_p13, %p1168_p12 }
 0x2da   : > { %p1171_p1 = pnand %p1170_p0, %p1164_p9 }
 0x2dc   : > { %1174 = shalt.err (!%p1171_p1)
}
 0x2dd   : > { %1062 = dma.vmem_to_hbm [thread:$0]  (%p1348_p4), %s1413_s1, 64, %s1411_s15, %s904_s25  }
 0x2de PF: > { %p1068_p2 = scmp.ge.s32.totalorder %s1225_s24, 2  ;;  %s930_s26 = sand.u32 1, %s1205_s19  }
 0x2df   : > { %s931_s0 = scalar_lea.sflag [#allocation4], %s930_s26 }
 0x2e0   : > { %p1065_p3 = pnand %p1068_p2, %p1355_p8 }
 0x2e2   : > { %1200 = dma.done.wait (!%p1065_p3), %s931_s0, 64  }
 0x2e3   : > { %1202 = vsyncadd (!%p1065_p3), %s931_s0, 4294967232  ;;  %s25_s24 = sadd.s32 1, %s1225_s24   ;;  %s1475_s19 = smov %s1209_s20 }
 0x2e4   : > { %p22_p5 = scmp.ge.s32.totalorder %s25_s24, 4   ;;  %s1476_s20 = smov %s1213_s21 }
 0x2e5   : > { %s1477_s21 = smov %s1361_s2  ;;  %s1478_s22 = smov %s1221_s23 }
 0x2e6   : > { %s1479_s23 = smov %s1481_s27  ;;  %24 = sbr.rel (!%p22_p5) target bundleno = 6 (0x6), region = 112 }
 0x2ed   :  { %936 = vsyncpa [#allocation4], 1 }
 0x2ee   :  { %938 = vsyncpa [#allocation4 + $0x1], 1 }

</bundles_post_ra>
